<compile_context>
chip_gen: v7x
topology: tpu7x:2x2x1
jax: 0.10.0
libtpu: 0.0.40
codegen_flags: <defaults>
</compile_context>

<pallas_src>
import functools

import jax
import jax.numpy as jnp
from jax import lax
from jax.experimental import pallas as pl
from jax.experimental.pallas import tpu as pltpu


def _pick_row_tile(OH, OW, max_rows=256, min_tiles=2):
    """Output-row tile TOH (must divide OH).

    Legality: the (1, TOH*OW, OC_pad) output block needs TOH*OW % 8 == 0
    unless TOH == OH (block equals the full dim).  Preference order:
      1. TOH*OW <= max_rows   (bounded matmul tile / live values / VMEM),
      2. OH // TOH >= min_tiles (both v7x TCs busy at batch 1; pipeline depth),
      3. largest such TOH     (fewest grid steps, biggest MXU tiles).
    When nothing fits max_rows, the smallest legal tile is used to bound VMEM.
    """
    candidates = []
    for d in range(1, OH + 1):
        if OH % d:
            continue
        tm = d * OW
        if tm % 8 != 0 and d != OH:
            continue
        candidates.append((tm <= max_rows, OH // d >= min(min_tiles, OH), d))
    for want_fits, want_tiles in ((True, True), (True, False), (False, False)):
        sel = [d for fits, tiles, d in candidates
               if fits >= want_fits and tiles >= want_tiles]
        if sel:
            return max(sel) if want_fits else min(sel)
    return OH


def _vmem_footprint(shape, itemsize):
    """Approximate VMEM bytes of a block: (8,128) tile padding on last two dims."""
    s = list(shape)
    if len(s) >= 1:
        s[-1] = ((s[-1] + 127) // 128) * 128
    if len(s) >= 2:
        s[-2] = ((s[-2] + 7) // 8) * 8
    n = 1
    for d in s:
        n *= d
    return n * itemsize


def _fused_conv_kernel(xp_ref, w_ref, b_ref, o_ref, patch_ref, *,
                       KH, KW, Cin, TOH, OW, sh, sw):
    """One (batch n, row-tile t) grid step: fused im2col into a VMEM patch
    scratch, then a SINGLE MXU contraction over K = KH*KW*Cin.

    xp_ref    : (1, Hp, Wp, Cin)       bf16  whole padded image of batch elem n
    w_ref     : (KH*KW*Cin, OC_pad)    bf16  masked weight, (kh, kw, c)-major
    b_ref     : (1, OC_pad)            f32
    o_ref     : (1, TOH*OW, OC_pad)          output tile (lane-dense OC)
    patch_ref : (TOH, OW, KH*KW*Cin)   bf16  VMEM scratch (im2col patch)
    """
    t = pl.program_id(1)
    row0 = pl.multiple_of(t * (TOH * sh), TOH * sh)
    TM = TOH * OW
    KP = KH * KW * Cin

    # Fused im2col: each kernel tap contributes a (TOH, OW, Cin) window written
    # to its static lane slice of the patch.  Strided rows/cols are read at the
    # ref level (pl.ds stride) so only the needed elements are loaded.
    for kh in range(KH):                                    # static -> unrolled
        rsl = (pl.ds(row0 + kh, TOH, stride=sh) if sh > 1
               else pl.ds(row0 + kh, TOH))
        for kw in range(KW):                                # static -> unrolled
            csl = pl.ds(kw, OW, stride=sw) if sw > 1 else pl.ds(kw, OW)
            c0 = (kh * KW + kw) * Cin
            patch_ref[:, :, c0:c0 + Cin] = xp_ref[0, rsl, csl, :]

    # One bf16 MXU matmul with f32 accumulation (K = KH*KW*Cin instead of
    # KH*KW tiny K=Cin dots), then an f32 bias epilogue.
    acc = jnp.dot(patch_ref[...].reshape(TM, KP), w_ref[...],
                  preferred_element_type=jnp.float32)        # (TM, OC_pad) f32
    o_ref[0] = (acc + b_ref[...]).astype(o_ref.dtype)


def sparse_conv2d_forward(x, weight, mask, bias, *, stride, padding):
    """x: (N, Cin, H, W); weight, mask: (OC, Cin, KH, KW); bias: (OC,).

    Matches SparseConv2d.forward: conv2d(x, weight * mask, bias, stride,
    padding), groups=1, dilation=1.  Output dtype follows x.dtype (a bf16
    caller gets the f32 accumulator rounded to bf16 at the store).
    """
    N, Cin, H, W = x.shape
    OC, _, KH, KW = weight.shape
    sh, sw = stride
    ph, pw = padding

    OH = (H + 2 * ph - KH) // sh + 1
    OW = (W + 2 * pw - KW) // sw + 1
    Hp, Wp = H + 2 * ph, W + 2 * pw
    KP = KH * KW * Cin

    # --- layout glue (one transform in, one out) ---
    # NCHW -> NHWC, spatial zero-pad, cast to bf16 for the MXU.
    xp = jnp.pad(jnp.transpose(x, (0, 2, 3, 1)),
                 ((0, 0), (ph, ph), (pw, pw), (0, 0))).astype(jnp.bfloat16)

    # Masked ("sparse") weight, OIHW -> (KH*KW*Cin, OC_pad), (kh, kw, c)-major
    # rows to match the kernel's patch lane order; lane-dense OC.
    OC_pad = ((OC + 127) // 128) * 128
    w = (weight * mask).transpose(2, 3, 1, 0).reshape(KP, OC)
    w = jnp.pad(w, ((0, 0), (0, OC_pad - OC))).astype(jnp.bfloat16)
    b = jnp.pad(bias, (0, OC_pad - OC)).reshape(1, OC_pad).astype(jnp.float32)

    TOH = _pick_row_tile(OH, OW)
    n_row_tiles = OH // TOH
    TM = TOH * OW

    # Rough double-buffered VMEM budget; raise the scoped limit only if needed
    # (v5e default is 16 MiB, v6e/v7x 32 MiB), capped at v7x's 64 MiB physical.
    out_itemsize = jnp.dtype(x.dtype).itemsize
    vmem_est = (2 * _vmem_footprint((Hp, Wp, Cin), 2)            # image (x2 buf)
                + 2 * _vmem_footprint((TM, OC_pad), out_itemsize)
                + 2 * _vmem_footprint((KP, OC_pad), 2)
                + 2 * _vmem_footprint((1, OC_pad), 4)
                + _vmem_footprint((TOH, OW, KP), 2))             # patch scratch
    vmem_limit = None
    if vmem_est > 16 * 1024 * 1024:
        vmem_limit = min(64 * 1024 * 1024, int(vmem_est * 5 // 4))

    kernel = functools.partial(_fused_conv_kernel, KH=KH, KW=KW, Cin=Cin,
                               TOH=TOH, OW=OW, sh=sh, sw=sw)

    # Honest scheduling hint: true OC flops, true output bytes.
    flops = 2 * N * OH * OW * KH * KW * Cin * OC
    bytes_accessed = (xp.size * 2 + w.size * 2 + b.size * 4
                      + N * OH * OW * OC * out_itemsize)

    out_p = pl.pallas_call(
        kernel,
        out_shape=jax.ShapeDtypeStruct((N, OH * OW, OC_pad), x.dtype),
        grid_spec=pltpu.PrefetchScalarGridSpec(
            num_scalar_prefetch=0,
            grid=(N, n_row_tiles),
            in_specs=[
                # Whole padded image of batch element n.  Its block index is
                # constant along the (inner) row-tile axis, so it is DMA'd only
                # once per image -> no im2col HBM read amplification.
                pl.BlockSpec((1, Hp, Wp, Cin), lambda n, t: (n, 0, 0, 0)),
                # Invariant masked weight and bias (tiny; constant index map).
                pl.BlockSpec((KP, OC_pad), lambda n, t: (0, 0)),
                pl.BlockSpec((1, OC_pad), lambda n, t: (0, 0)),
            ],
            out_specs=pl.BlockSpec((1, TM, OC_pad), lambda n, t: (n, t, 0)),
            scratch_shapes=[pltpu.VMEM((TOH, OW, KP), jnp.bfloat16)],
        ),
        compiler_params=pltpu.CompilerParams(
            # Both axes independent -> v7x megacore can split either.
            dimension_semantics=("parallel", "parallel"),
            vmem_limit_bytes=vmem_limit,
        ),
        cost_estimate=pl.CostEstimate(flops=flops, transcendentals=0,
                                      bytes_accessed=bytes_accessed),
    )(xp, w, b)

    # Drop padded output channels, back to NCHW.
    # TODO(synk): if the surrounding model consumes NHWC (and/or bf16), return
    # out_p directly -- this slice + transpose is an extra full-tensor HBM pass.
    out = out_p.reshape(N, OH, OW, OC_pad)[..., :OC].transpose(0, 3, 1, 2)
    return out


# ----------------------------------------------------------------------------
# Demo / self-check
# ----------------------------------------------------------------------------
if __name__ == "__main__":
    key = jax.random.PRNGKey(0)
    k_x, k_w, k_b, k_m = jax.random.split(key, 4)

    # Small shapes consistent with the module: N=2, Cin=4, H=W=16, OC=8, 3x3.
    N, Cin, H, W = 2, 4, 16, 16
    OC, KH, KW = 8, 3, 3
    stride = (1, 1)
    padding = (1, 1)

    x = jax.random.normal(k_x, (N, Cin, H, W), dtype=jnp.float32)
    weight = jax.random.normal(k_w, (OC, Cin, KH, KW), dtype=jnp.float32)
    bias = jax.random.normal(k_b, (OC,), dtype=jnp.float32)
    # Deterministic ~50% sparsity mask, as the module stores weight + mask.
    mask = (jax.random.uniform(k_m, (OC, Cin, KH, KW)) > 0.5).astype(jnp.float32)

    fwd = jax.jit(functools.partial(sparse_conv2d_forward,
                                    stride=stride, padding=padding))
    out = jax.block_until_ready(fwd(x, weight, mask, bias))

    # Reference: XLA conv fed the same bf16-rounded operands with f32
    # accumulation (matches the kernel's bf16-operand / f32-accumulate math).
    x_bf = x.astype(jnp.bfloat16).astype(jnp.float32)
    w_bf = (weight * mask).astype(jnp.bfloat16).astype(jnp.float32)
    ref = lax.conv_general_dilated(
        x_bf, w_bf,
        window_strides=stride,
        padding=[(padding[0], padding[0]), (padding[1], padding[1])],
        dimension_numbers=("NCHW", "OIHW", "NCHW"),
        precision=lax.Precision.HIGHEST,
        preferred_element_type=jnp.float32,
    ) + bias.reshape(1, OC, 1, 1)

    assert out.shape == (N, OC, H, W), out.shape
    err = float(jnp.max(jnp.abs(out - ref)))
    assert err < 1e-3, err

    print("KERNEL_OK")
</pallas_src>

<mosaic_0001>
module attributes {stable_mosaic.version = 11 : i64} {
  func.func @_fused_conv_kernel(%arg0: i32, %arg1: i32, %arg2: memref<1x18x18x4xbf16, #tpu.memory_space<vmem>>, %arg3: memref<36x128xbf16, #tpu.memory_space<vmem>>, %arg4: memref<1x128xf32, #tpu.memory_space<vmem>>, %arg5: memref<1x128x128xf32, #tpu.memory_space<vmem>>, %arg6: memref<8x16x36xbf16, #tpu.memory_space<vmem>>) attributes {dimension_semantics = [#tpu.dimension_semantics<parallel>, #tpu.dimension_semantics<parallel>], iteration_bounds = array<i64: 2, 2>, scalar_prefetch = 0 : i64, scratch_operands = 1 : i64, tpu.core_type = #tpu.core_type<tc>, window_params = [{transform_indices = @transform_0, window_bounds = array<i64: 1, 18, 18, 4>}, {pipeline_mode = #tpu.pipeline_mode<synchronous>, transform_indices = @transform_1, window_bounds = array<i64: 36, 128>}, {pipeline_mode = #tpu.pipeline_mode<synchronous>, transform_indices = @transform_2, window_bounds = array<i64: 1, 128>}, {transform_indices = @transform_3, window_bounds = array<i64: 1, 128, 128>}]} {
    %c8_i32 = arith.constant 8 : i32
    %0 = arith.muli %arg1, %c8_i32 : i32
    %1 = tpu.assume_multiple %0, 8 : i32
    %c0_i32 = arith.constant 0 : i32
    %2 = arith.addi %1, %c0_i32 : i32
    %c0 = arith.constant 0 : index
    %3 = arith.index_cast %2 : i32 to index
    %c0_0 = arith.constant 0 : index
    %c0_1 = arith.constant 0 : index
    %4 = vector.load %arg2[%c0, %3, %c0_0, %c0_1] : memref<1x18x18x4xbf16, #tpu.memory_space<vmem>>, vector<1x8x16x4xbf16>
    %5 = vector.shape_cast %4 : vector<1x8x16x4xbf16> to vector<8x16x4xbf16>
    %c0_2 = arith.constant 0 : index
    %c0_3 = arith.constant 0 : index
    %c0_4 = arith.constant 0 : index
    %6 = vector.load %arg6[%c0_2, %c0_3, %c0_4] : memref<8x16x36xbf16, #tpu.memory_space<vmem>>, vector<8x16x4xbf16>
    tpu.vector_store %arg6[%c0_2, %c0_3, %c0_4], %5 {strides = array<i32>} : memref<8x16x36xbf16, #tpu.memory_space<vmem>>, vector<8x16x4xbf16>,
    %c0_5 = arith.constant 0 : index
    %7 = arith.index_cast %2 : i32 to index
    %c1 = arith.constant 1 : index
    %c0_6 = arith.constant 0 : index
    %8 = vector.load %arg2[%c0_5, %7, %c1, %c0_6] : memref<1x18x18x4xbf16, #tpu.memory_space<vmem>>, vector<1x8x16x4xbf16>
    %9 = vector.shape_cast %8 : vector<1x8x16x4xbf16> to vector<8x16x4xbf16>
    %c0_7 = arith.constant 0 : index
    %c0_8 = arith.constant 0 : index
    %c4 = arith.constant 4 : index
    %10 = vector.load %arg6[%c0_7, %c0_8, %c4] : memref<8x16x36xbf16, #tpu.memory_space<vmem>>, vector<8x16x4xbf16>
    tpu.vector_store %arg6[%c0_7, %c0_8, %c4], %9 {strides = array<i32>} : memref<8x16x36xbf16, #tpu.memory_space<vmem>>, vector<8x16x4xbf16>,
    %c0_9 = arith.constant 0 : index
    %11 = arith.index_cast %2 : i32 to index
    %c2 = arith.constant 2 : index
    %c0_10 = arith.constant 0 : index
    %12 = vector.load %arg2[%c0_9, %11, %c2, %c0_10] : memref<1x18x18x4xbf16, #tpu.memory_space<vmem>>, vector<1x8x16x4xbf16>
    %13 = vector.shape_cast %12 : vector<1x8x16x4xbf16> to vector<8x16x4xbf16>
    %c0_11 = arith.constant 0 : index
    %c0_12 = arith.constant 0 : index
    %c8 = arith.constant 8 : index
    %14 = vector.load %arg6[%c0_11, %c0_12, %c8] : memref<8x16x36xbf16, #tpu.memory_space<vmem>>, vector<8x16x4xbf16>
    tpu.vector_store %arg6[%c0_11, %c0_12, %c8], %13 {strides = array<i32>} : memref<8x16x36xbf16, #tpu.memory_space<vmem>>, vector<8x16x4xbf16>,
    %c1_i32 = arith.constant 1 : i32
    %15 = arith.addi %1, %c1_i32 : i32
    %c0_13 = arith.constant 0 : index
    %16 = arith.index_cast %15 : i32 to index
    %c0_14 = arith.constant 0 : index
    %c0_15 = arith.constant 0 : index
    %17 = vector.load %arg2[%c0_13, %16, %c0_14, %c0_15] : memref<1x18x18x4xbf16, #tpu.memory_space<vmem>>, vector<1x8x16x4xbf16>
    %18 = vector.shape_cast %17 : vector<1x8x16x4xbf16> to vector<8x16x4xbf16>
    %c0_16 = arith.constant 0 : index
    %c0_17 = arith.constant 0 : index
    %c12 = arith.constant 12 : index
    %19 = vector.load %arg6[%c0_16, %c0_17, %c12] : memref<8x16x36xbf16, #tpu.memory_space<vmem>>, vector<8x16x4xbf16>
    tpu.vector_store %arg6[%c0_16, %c0_17, %c12], %18 {strides = array<i32>} : memref<8x16x36xbf16, #tpu.memory_space<vmem>>, vector<8x16x4xbf16>,
    %c0_18 = arith.constant 0 : index
    %20 = arith.index_cast %15 : i32 to index
    %c1_19 = arith.constant 1 : index
    %c0_20 = arith.constant 0 : index
    %21 = vector.load %arg2[%c0_18, %20, %c1_19, %c0_20] : memref<1x18x18x4xbf16, #tpu.memory_space<vmem>>, vector<1x8x16x4xbf16>
    %22 = vector.shape_cast %21 : vector<1x8x16x4xbf16> to vector<8x16x4xbf16>
    %c0_21 = arith.constant 0 : index
    %c0_22 = arith.constant 0 : index
    %c16 = arith.constant 16 : index
    %23 = vector.load %arg6[%c0_21, %c0_22, %c16] : memref<8x16x36xbf16, #tpu.memory_space<vmem>>, vector<8x16x4xbf16>
    tpu.vector_store %arg6[%c0_21, %c0_22, %c16], %22 {strides = array<i32>} : memref<8x16x36xbf16, #tpu.memory_space<vmem>>, vector<8x16x4xbf16>,
    %c0_23 = arith.constant 0 : index
    %24 = arith.index_cast %15 : i32 to index
    %c2_24 = arith.constant 2 : index
    %c0_25 = arith.constant 0 : index
    %25 = vector.load %arg2[%c0_23, %24, %c2_24, %c0_25] : memref<1x18x18x4xbf16, #tpu.memory_space<vmem>>, vector<1x8x16x4xbf16>
    %26 = vector.shape_cast %25 : vector<1x8x16x4xbf16> to vector<8x16x4xbf16>
    %c0_26 = arith.constant 0 : index
    %c0_27 = arith.constant 0 : index
    %c20 = arith.constant 20 : index
    %27 = vector.load %arg6[%c0_26, %c0_27, %c20] : memref<8x16x36xbf16, #tpu.memory_space<vmem>>, vector<8x16x4xbf16>
    tpu.vector_store %arg6[%c0_26, %c0_27, %c20], %26 {strides = array<i32>} : memref<8x16x36xbf16, #tpu.memory_space<vmem>>, vector<8x16x4xbf16>,
    %c2_i32 = arith.constant 2 : i32
    %28 = arith.addi %1, %c2_i32 : i32
    %c0_28 = arith.constant 0 : index
    %29 = arith.index_cast %28 : i32 to index
    %c0_29 = arith.constant 0 : index
    %c0_30 = arith.constant 0 : index
    %30 = vector.load %arg2[%c0_28, %29, %c0_29, %c0_30] : memref<1x18x18x4xbf16, #tpu.memory_space<vmem>>, vector<1x8x16x4xbf16>
    %31 = vector.shape_cast %30 : vector<1x8x16x4xbf16> to vector<8x16x4xbf16>
    %c0_31 = arith.constant 0 : index
    %c0_32 = arith.constant 0 : index
    %c24 = arith.constant 24 : index
    %32 = vector.load %arg6[%c0_31, %c0_32, %c24] : memref<8x16x36xbf16, #tpu.memory_space<vmem>>, vector<8x16x4xbf16>
    tpu.vector_store %arg6[%c0_31, %c0_32, %c24], %31 {strides = array<i32>} : memref<8x16x36xbf16, #tpu.memory_space<vmem>>, vector<8x16x4xbf16>,
    %c0_33 = arith.constant 0 : index
    %33 = arith.index_cast %28 : i32 to index
    %c1_34 = arith.constant 1 : index
    %c0_35 = arith.constant 0 : index
    %34 = vector.load %arg2[%c0_33, %33, %c1_34, %c0_35] : memref<1x18x18x4xbf16, #tpu.memory_space<vmem>>, vector<1x8x16x4xbf16>
    %35 = vector.shape_cast %34 : vector<1x8x16x4xbf16> to vector<8x16x4xbf16>
    %c0_36 = arith.constant 0 : index
    %c0_37 = arith.constant 0 : index
    %c28 = arith.constant 28 : index
    %36 = vector.load %arg6[%c0_36, %c0_37, %c28] : memref<8x16x36xbf16, #tpu.memory_space<vmem>>, vector<8x16x4xbf16>
    tpu.vector_store %arg6[%c0_36, %c0_37, %c28], %35 {strides = array<i32>} : memref<8x16x36xbf16, #tpu.memory_space<vmem>>, vector<8x16x4xbf16>,
    %c0_38 = arith.constant 0 : index
    %37 = arith.index_cast %28 : i32 to index
    %c2_39 = arith.constant 2 : index
    %c0_40 = arith.constant 0 : index
    %38 = vector.load %arg2[%c0_38, %37, %c2_39, %c0_40] : memref<1x18x18x4xbf16, #tpu.memory_space<vmem>>, vector<1x8x16x4xbf16>
    %39 = vector.shape_cast %38 : vector<1x8x16x4xbf16> to vector<8x16x4xbf16>
    %c0_41 = arith.constant 0 : index
    %c0_42 = arith.constant 0 : index
    %c32 = arith.constant 32 : index
    %40 = vector.load %arg6[%c0_41, %c0_42, %c32] : memref<8x16x36xbf16, #tpu.memory_space<vmem>>, vector<8x16x4xbf16>
    tpu.vector_store %arg6[%c0_41, %c0_42, %c32], %39 {strides = array<i32>} : memref<8x16x36xbf16, #tpu.memory_space<vmem>>, vector<8x16x4xbf16>,
    %c0_43 = arith.constant 0 : index
    %c0_44 = arith.constant 0 : index
    %c0_45 = arith.constant 0 : index
    %41 = vector.load %arg6[%c0_43, %c0_44, %c0_45] : memref<8x16x36xbf16, #tpu.memory_space<vmem>>, vector<8x16x36xbf16>
    %42 = vector.shape_cast %41 : vector<8x16x36xbf16> to vector<128x36xbf16>
    %c0_46 = arith.constant 0 : index
    %c0_47 = arith.constant 0 : index
    %43 = vector.load %arg3[%c0_46, %c0_47] : memref<36x128xbf16, #tpu.memory_space<vmem>>, vector<36x128xbf16>
    %cst = arith.constant dense<0.000000e+00> : vector<128x128xf32>
    %44 = tpu.matmul %42, %43, %cst {dimension_numbers = #tpu.dot_dimension_numbers<[1], [0], [0], [1], [0, 0, 1, 1], [], []>} : vector<128x36xbf16>, vector<36x128xbf16>, vector<128x128xf32> -> vector<128x128xf32>
    %c0_48 = arith.constant 0 : index
    %c0_49 = arith.constant 0 : index
    %45 = vector.load %arg4[%c0_48, %c0_49] : memref<1x128xf32, #tpu.memory_space<vmem>>, vector<1x128xf32>
    %46 = vector.broadcast %45 : vector<1x128xf32> to vector<128x128xf32>
    %47 = arith.addf %44, %46 : vector<128x128xf32>
    %c0_50 = arith.constant 0 : index
    %c0_51 = arith.constant 0 : index
    %c0_52 = arith.constant 0 : index
    %48 = vector.load %arg5[%c0_50, %c0_51, %c0_52] : memref<1x128x128xf32, #tpu.memory_space<vmem>>, vector<1x128x128xf32>
    %49 = vector.shape_cast %48 : vector<1x128x128xf32> to vector<128x128xf32>
    %50 = vector.shape_cast %47 : vector<128x128xf32> to vector<1x128x128xf32>
    tpu.vector_store %arg5[%c0_50, %c0_51, %c0_52], %50 {strides = array<i32>} : memref<1x128x128xf32, #tpu.memory_space<vmem>>, vector<1x128x128xf32>,
    return
  }
  func.func @transform_0(%arg0: i32, %arg1: i32) -> (i32, i32, i32, i32) {
    %c0_i32 = arith.constant 0 : i32
    %c0_i32_0 = arith.constant 0 : i32
    %c0_i32_1 = arith.constant 0 : i32
    %c0_i32_2 = arith.constant 0 : i32
    return %arg0, %c0_i32, %c0_i32_0, %c0_i32_1 : i32, i32, i32, i32
  }
  func.func @transform_1(%arg0: i32, %arg1: i32) -> (i32, i32) {
    %c0_i32 = arith.constant 0 : i32
    %c0_i32_0 = arith.constant 0 : i32
    %c0_i32_1 = arith.constant 0 : i32
    return %c0_i32, %c0_i32_0 : i32, i32
  }
  func.func @transform_2(%arg0: i32, %arg1: i32) -> (i32, i32) {
    %c0_i32 = arith.constant 0 : i32
    %c0_i32_0 = arith.constant 0 : i32
    %c0_i32_1 = arith.constant 0 : i32
    return %c0_i32, %c0_i32_0 : i32, i32
  }
  func.func @transform_3(%arg0: i32, %arg1: i32) -> (i32, i32, i32) {
    %c0_i32 = arith.constant 0 : i32
    %c0_i32_0 = arith.constant 0 : i32
    return %arg0, %arg1, %c0_i32 : i32, i32, i32
  }
}

</mosaic_0001>

<bundles_post_ra>
// kernel: sparse_conv2d_forward.1
= control target key start
LH: loop header
LB: loop body
LE: loop exit
PB: predicated region body
PF: predicated region fallthrough
CT: control target
= control target key end

     0   :  { %s2377_s12 = smov 0   ;;  %s2379_s13 = smov 0   ;;  %s2789_s0 = inlined_call_operand.vmem [shape: bf16[2,18,18,4], index: 0, kind: input, shape index: {}]   ;;  %s2790_s1 = inlined_call_operand.vmem [shape: bf16[36,128], index: 1, kind: input, shape index: {}]   ;;  %s2791_s2 = inlined_call_operand.vmem [shape: f32[1,128], index: 2, kind: input, shape index: {}]   ;;  %s2792_s3 = inlined_call_operand.vmem [shape: f32[2,256,128], index: 3, kind: output, shape index: {}]  }
   0x1   :  { %s2381_s14 = smov 0   ;;  %s2383_s15 = smov 0  }
   0x2   :  { %s2385_s16 = smov 0  }
   0x3 LB: > { %s22_s17 = sadd.s32 1, %s2339_s14  ;;  %s25_s18 = sadd.s32 1, %s2343_s15  ;;  %s2347_s16 = sphi %s2385_s16, %s13_s16   ;;  %s2343_s15 = sphi %s2383_s15, %s2796_s15   ;;  %s2339_s14 = sphi %s2381_s14, %s2795_s14   ;;  %s2335_s13 = sphi %s2379_s13, %s2794_s13   ;;  %s2331_s12 = sphi %s2377_s12, %s2793_s12  }
   0x4   : > { %p23_p0 = scmp.ge.s32.totalorder %s22_s17, 2  ;;  %p1821_p1 = scmp.ge.s32.totalorder %s2347_s16, 1 }
   0x5   : > { %p151_p2 = scmp.lt.s32.totalorder %s2347_s16, 5 }
   0x6   : > { %s2798_s17 = smov (%p23_p0, %s22_s17), 0  ;;  %s2800_s18 = smov (!%p23_p0, %s25_s18), %s2343_s15 }
   0x7   : > { %p152_p3 = pnand %p1821_p1, %p151_p2  ;;  %p27_p4 = scmp.ge.s32.totalorder %s2800_s18, 2 }
   0x8   : > { %p179_p5 = scmp.lt.s32.totalorder (!%p152_p3), %s2335_s13, 1  ;;  %s2095_s19 = smul.u32 (!%p152_p3), 96, %s2331_s12  ;;  %vm578_vm0 = vcmask (!%p152_p3), 1046528   ;;  %vm360_vm1 = vsmask.f32 (!%p152_p3), 7424  ;;  %vm263_vm2 = vcmask (!%p152_p3), 31744  }
   0x9   : > { %s2802_s18 = smov (%p27_p4, %s2800_s18), 0  ;;  %155 = sbr.rel (%p152_p3) target bundleno = 489 (0x1e9), region = 32 }
   0xa   : > { %s2349_s25 = smov (!%p152_p3), 12   ;;  %s2350_s26 = smov (!%p152_p3), 8   ;;  %vm481_vm3 = vcmask (!%p152_p3), 64544   ;;  %vm627_vm4 = vcmask (!%p152_p3), 97344   ;;  %vm720_vm5 = vcmask (!%p152_p3), 130144   ;;  %vm1606_vm6 = vcmask (!%p152_p3), 1041408  }
   0xb   : > { %s2351_s27 = smov (!%p152_p3), 4   ;;  %s2352_s28 = smov (!%p152_p3), 16   ;;  %vm937_vm7 = vcmask (!%p152_p3), 162944   ;;  %vm1082_vm8 = vcmask (!%p152_p3), 195744   ;;  %vm1175_vm9 = vcmask (!%p152_p3), 228544   ;;  %vm1392_vm10 = vcmask (!%p152_p3), 261344  }
   0xc   : > { %s2353_s29 = smov (!%p152_p3), 20   ;;  %s2354_s30 = smov (!%p152_p3), 24   ;;  %vm1537_vm11 = vcmask (!%p152_p3), 294144   ;;  %vm1581_vm12 = vcmask (!%p152_p3), 293888  }
   0xd   : > { %s2355_s4 = smov (!%p152_p3), 28   ;;  %s2356_s5 = smov (!%p152_p3), 32  }
  0x10   : > { %s2804_s13 = smov (!%p179_p5, %s2335_s13), 1 }
  0x11   : > { %s2137_s20 = smul.u32 216, %s2804_s13 }
  0x13   : > { %s183_s23 = scalar_lea.vmem %s2789_s0, %s2137_s20  ;;  %s1824_s20 = sshll.u32 %s2804_s13, 5 }
  0x14   : > { %s2416_s24 = scalar_lea.vmem %s183_s23, %s2095_s19  ;;  %s1823_s19 = sshll.u32 %s2331_s12, 4 }
  0x15   : > { %v2186_v0 = vld [vmem:[%s2416_s24 + $0x3c] sm:$0xff]   ;;  %v2187_v1 = vld [vmem:[%s2416_s24 + $0xc] sm:$0xff]   ;;  %v2189_v3 = vld [vmem:[%s2416_s24 + $0x38] ss:$0 sps:$4 sm:$0x11]   ;;  %p187_p6 = scmp.lt.s32.totalorder %s1823_s19, 31 }
  0x16   : > { %704 = vrot.lane.b32.xlu1 %v2186_v0, %s2349_s25  ;;  %696 = vrot.lane.b32.xlu0 %v2187_v1, %s2349_s25  ;;  %v2188_v2 = vld [vmem:[%s2416_s24 + $0x30] sm:$0xfe]   ;;  %v592_v6 = vrot.slane %v2189_v3, 1  ;;  %v2190_v7 = vld [vmem:[%s2416_s24] sm:$0xfe]  }
  0x17   : > { %v2196_v4 = vld [vmem:[%s2416_s24 + $0xc] sm:$0xff]   ;;  %v591_v5 = vrot.slane %v2188_v2, 1  ;;  %v2191_v8 = vld [vmem:[%s2416_s24 + $0x8] ss:$0 sps:$4 sm:$0x11]   ;;  %v579_v11 = vrot.slane %v2190_v7, 1 }
  0x18   : > { %v374_v9 = vshrl.u32 %v2196_v4, 16  ;;  %v2192_v12 = vld [vmem:[%s2416_s24 + $0x3c] sm:$0xfe]   ;;  %v376_v13 = vshll.u32 %v2196_v4, 16  ;;  %v580_v14 = vrot.slane %v2191_v8, 1  ;;  %v2202_v38 = vld [vmem:[%s2416_s24 + $0x30] sm:$0xff]  }
  0x19   : > { %v593_v10 = vsel %vm578_vm0, %v591_v5, %v592_v6  ;;  %v2193_v15 = vld [vmem:[%s2416_s24 + $0x44] ss:$0 sps:$4 sm:$0x11]   ;;  %v594_v16 = vrot.slane %v2192_v12, 1  ;;  %v2194_v20 = vld [vmem:[%s2416_s24 + $0xc] sm:$0xfe]  }
  0x1a   : > { %611 = vrot.lane.b32.xlu1 %v593_v10, %s2350_s26  ;;  %v378_v17 = vrot.slane %v376_v13, 1  ;;  %v581_v18 = vsel %vm578_vm0, %v579_v11, %v580_v14  ;;  %v595_v19 = vrot.slane %v2193_v15, 1  ;;  %v2195_v21 = vld [vmem:[%s2416_s24 + $0x14] ss:$0 sps:$4 sm:$0x11]   ;;  %v582_v23 = vrot.slane %v2194_v20, 1 }
  0x1b   : > { %603 = vrot.lane.b32.xlu0 %v581_v18, %s2350_s26  ;;  %v583_v24 = vrot.slane %v2195_v21, 1  ;;  %v2197_v25 = vld [vmem:[%s2416_s24 + $0x14] ss:$0 sps:$4 sm:$0x11]   ;;  %v2198_v26 = vld [vmem:[%s2416_s24] sm:$0xff]   ;;  %v410_v47 = vshrl.u32 %v2202_v38, 16 }
  0x1c   : > { %v596_v22 = vsel %vm578_vm0, %v594_v16, %v595_v19  ;;  %v379_v27 = vor.u32 %v378_v17, %v374_v9  ;;  %v381_v29 = vshll.u32 %v2197_v25, 16  ;;  %v2199_v30 = vld [vmem:[%s2416_s24 + $0x8] ss:$0 sps:$4 sm:$0x11]   ;;  %v362_v31 = vshrl.u32 %v2198_v26, 16  ;;  %v2200_v36 = vld [vmem:[%s2416_s24 + $0x3c] sm:$0xff]  }
  0x1d   : > { %v584_v28 = vsel %vm578_vm0, %v582_v23, %v583_v24  ;;  %v364_v32 = vshll.u32 %v2198_v26, 16  ;;  %v369_v35 = vshll.u32 %v2199_v30, 16  ;;  %v2201_v37 = vld [vmem:[%s2416_s24 + $0x44] ss:$0 sps:$4 sm:$0x11]   ;;  %v422_v42 = vshrl.u32 %v2200_v36, 16 }
  0x1e   : > { %613 = vrot.lane.b32.xlu1 %v596_v22, %s2350_s26  ;;  %v383_v33 = vrot.slane %v381_v29, 1  ;;  %v424_v43 = vshll.u32 %v2200_v36, 16  ;;  %v429_v44 = vshll.u32 %v2201_v37, 16  ;;  %v2203_v45 = vld [vmem:[%s2416_s24 + $0x38] ss:$0 sps:$4 sm:$0x11]  }
  0x1f   : > { %605 = vrot.lane.b32.xlu0 %v584_v28, %s2350_s26  ;;  %v366_v34 = vrot.slane %v364_v32, 1  ;;  %v371_v41 = vrot.slane %v369_v35, 1  ;;  %v412_v48 = vshll.u32 %v2202_v38, 16  ;;  %v417_v51 = vshll.u32 %v2203_v45, 16  ;;  %v2206_v53 = vld [vmem:[%s2416_s24 + $0x3c] sm:$0xff]   ;;  %v2204_v58 = vld [vmem:[%s2416_s24 + $0x48] sm:$0xff]  }
  0x20   : > { %v384_v39 = vsel %vm360_vm1, %v379_v27, %v383_v33  ;;  %v426_v49 = vrot.slane %v424_v43, 1  ;;  %v431_v50 = vrot.slane %v429_v44, 1  ;;  %v2207_v56 = vld [vmem:[%s2416_s24 + $0x44] ss:$0 sps:$4 sm:$0x11]   ;;  %v866_v59 = vshrl.u32 %v2206_v53, 16 }
  0x21   : > { %v367_v40 = vor.u32 %v366_v34, %v362_v31  ;;  %v414_v52 = vrot.slane %v412_v48, 1  ;;  %v419_v55 = vrot.slane %v417_v51, 1  ;;  %v868_v60 = vshll.u32 %v2206_v53, 16  ;;  %v2205_v62 = vld [vmem:[%s2416_s24 + $0x18] sm:$0xff]   ;;  %v2208_v0 = vld [vmem:[%s2416_s24 + $0xc] sm:$0xff]   ;;  %s2806_s19 = smov (!%p187_p6, %s1823_s19), 31 }
  0x22   : > { %459 = vrot.lane.b32.xlu1 %v384_v39, %s2351_s27  ;;  %v427_v54 = vor.u32 %v426_v49, %v422_v42  ;;  %v873_v63 = vshll.u32 %v2207_v56, 16  ;;  %v2209_v3 = vld [vmem:[%s2416_s24 + $0x14] ss:$0 sps:$4 sm:$0x11]   ;;  %v818_v5 = vshrl.u32 %v2208_v0, 16  ;;  %v820_v6 = vshll.u32 %v2208_v0, 16  ;;  %s190_s21 = sadd.s32 %s1824_s20, %s2806_s19 }
  0x23   : > { %v372_v46 = vsel %vm360_vm1, %v367_v40, %v371_v41  ;;  %v415_v57 = vor.u32 %v414_v52, %v410_v47  ;;  %v870_v2 = vrot.slane %v868_v60, 1  ;;  %v2210_v7 = vld [vmem:[%s2416_s24 + $0x48] sm:$0xff]   ;;  %v825_v9 = vshll.u32 %v2209_v3, 16  ;;  %v2211_v10 = vld [vmem:[%s2416_s24 + $0x50] ss:$0 sps:$4 sm:$0x11]  }
  0x24   : > { %457 = vrot.lane.b32.xlu0 %v372_v46, %s2351_s27  ;;  %v432_v61 = vsel %vm360_vm1, %v427_v54, %v431_v50  ;;  %v875_v4 = vrot.slane %v873_v63, 1  ;;  %v822_v11 = vrot.slane %v820_v6, 1  ;;  %v878_v12 = vshrl.u32 %v2210_v7, 16  ;;  %v2212_v14 = vld [vmem:[%s2416_s24 + $0x18] sm:$0xff]   ;;  %v2216_v34 = vld [vmem:[%s2416_s24 + $0xc] sm:$0xfe]  }
  0x25   : > { %v420_v1 = vsel %vm360_vm1, %v415_v57, %v419_v55  ;;  %v871_v8 = vor.u32 %v870_v2, %v866_v59  ;;  %v880_v13 = vshll.u32 %v2210_v7, 16  ;;  %v827_v16 = vrot.slane %v825_v9, 1  ;;  %v2213_v20 = vld [vmem:[%s2416_s24 + $0x20] ss:$0 sps:$4 sm:$0x11]   ;;  %v2226_v49 = vld [vmem:[%s2416_s24 + $0x48] sm:$0xff]  }
  0x26   : > { %467 = vrot.lane.b32.xlu1 %v432_v61, %s2351_s27  ;;  %v885_v17 = vshll.u32 %v2211_v10, 16  ;;  %v823_v18 = vor.u32 %v822_v11, %v818_v5  ;;  %v830_v21 = vshrl.u32 %v2212_v14, 16  ;;  %v832_v22 = vshll.u32 %v2212_v14, 16  ;;  %v2214_v28 = vld [vmem:[%s2416_s24 + $0x3c] sm:$0xfe]   ;;  %v2222_v53 = vld [vmem:[%s2416_s24 + $0x48] sm:$0xff]  }
  0x27   : > { %v876_v15 = vsel %vm360_vm1, %v871_v8, %v875_v4  ;;  %v882_v19 = vrot.slane %v880_v13, 1  ;;  %v837_v27 = vshll.u32 %v2213_v20, 16  ;;  %v2215_v29 = vld [vmem:[%s2416_s24 + $0x44] ss:$0 sps:$4 sm:$0x11]   ;;  %v1046_v33 = vrot.slane %v2214_v28, 1 }
  0x28   : > { %465 = vrot.lane.b32.xlu0 %v420_v1, %s2351_s27  ;;  %v887_v23 = vrot.slane %v885_v17, 1  ;;  %v828_v24 = vsel %vm360_vm1, %v823_v18, %v827_v16  ;;  %v834_v26 = vrot.slane %v832_v22, 1  ;;  %v1047_v35 = vrot.slane %v2215_v29, 1  ;;  %v2217_v36 = vld [vmem:[%s2416_s24 + $0x14] ss:$0 sps:$4 sm:$0x11]  }
  0x29   : > { %v883_v25 = vor.u32 %v882_v19, %v878_v12  ;;  %v839_v32 = vrot.slane %v837_v27, 1  ;;  %v1034_v38 = vrot.slane %v2216_v34, 1  ;;  %v1035_v39 = vrot.slane %v2217_v36, 1  ;;  %v2218_v40 = vld [vmem:[%s2416_s24 + $0x48] sm:$0xfe]   ;;  %v2228_v52 = vld [vmem:[%s2416_s24 + $0x18] sm:$0xff]  }
  0x2a   : > { %706 = vrot.lane.b32.xlu1 %v2204_v58, %s2349_s25  ;;  %v835_v31 = vor.u32 %v834_v26, %v830_v21  ;;  %v2219_v41 = vld [vmem:[%s2416_s24 + $0x50] ss:$0 sps:$4 sm:$0x11]   ;;  %v1048_v42 = vsel %vm578_vm0, %v1046_v33, %v1047_v35  ;;  %v1049_v44 = vrot.slane %v2218_v40, 1  ;;  %v2220_v46 = vld [vmem:[%s2416_s24 + $0x18] sm:$0xfe]  }
  0x2b   : > { %v888_v30 = vsel %vm360_vm1, %v883_v25, %v887_v23  ;;  %v1036_v43 = vsel %vm578_vm0, %v1034_v38, %v1035_v39  ;;  %v1050_v45 = vrot.slane %v2219_v41, 1  ;;  %v2221_v47 = vld [vmem:[%s2416_s24 + $0x20] ss:$0 sps:$4 sm:$0x11]   ;;  %v1037_v48 = vrot.slane %v2220_v46, 1  ;;  %v2223_v55 = vld [vmem:[%s2416_s24 + $0x18] sm:$0xff]  }
  0x2c   : > { %698 = vrot.lane.b32.xlu0 %v2205_v62, %s2349_s25  ;;  %v840_v37 = vsel %vm360_vm1, %v835_v31, %v839_v32  ;;  %v1038_v51 = vrot.slane %v2221_v47, 1  ;;  %v1321_v56 = vshrl.u32 %v2226_v49, 16  ;;  %v1323_v57 = vshll.u32 %v2226_v49, 16  ;;  %v2227_v58 = vld [vmem:[%s2416_s24 + $0x50] ss:$0 sps:$4 sm:$0x11]  }
  0x2d   : > { %v1051_v50 = vsel %vm578_vm0, %v1049_v44, %v1050_v45  ;;  %v1273_v59 = vshrl.u32 %v2228_v52, 16  ;;  %v1275_v61 = vshll.u32 %v2228_v52, 16  ;;  %v2224_v62 = vld [vmem:[%s2416_s24 + $0x54] sm:$0xff]   ;;  %v1328_v63 = vshll.u32 %v2227_v58, 16  ;;  %v2225_v1 = vld [vmem:[%s2416_s24 + $0x24] sm:$0xff]   ;;  %s1825_s22 = sshll.u32 %s190_s21, 3 }
  0x2e   : > { %921 = vrot.lane.b32.xlu1 %v876_v15, %s2352_s28  ;;  %v1039_v54 = vsel %vm578_vm0, %v1037_v48, %v1038_v51  ;;  %v1325_v60 = vrot.slane %v1323_v57, 1  ;;  %v2229_v0 = vld [vmem:[%s2416_s24 + $0x20] ss:$0 sps:$4 sm:$0x11]   ;;  %v2230_v3 = vld [vmem:[%s2416_s24 + $0x54] sm:$0xff]   ;;  %v2232_v7 = vld [vmem:[%s2416_s24 + $0x24] sm:$0xff]  }
  0x2f   : > { %v1277_v2 = vrot.slane %v1275_v61, 1  ;;  %v1330_v4 = vrot.slane %v1328_v63, 1  ;;  %v1280_v5 = vshll.u32 %v2229_v0, 16  ;;  %v2231_v6 = vld [vmem:[%s2416_s24 + $0x5c] ss:$0 sps:$4 sm:$0x11]  }
  0x30   : > { %913 = vrot.lane.b32.xlu0 %v828_v24, %s2352_s28  ;;  %v1326_v8 = vor.u32 %v1325_v60, %v1321_v56  ;;  %v1333_v9 = vshrl.u32 %v2230_v3, 16  ;;  %v1335_v10 = vshll.u32 %v2230_v3, 16  ;;  %v1340_v13 = vshll.u32 %v2231_v6, 16  ;;  %v2238_v14 = vld [vmem:[%s2416_s24 + $0x48] sm:$0xff]   ;;  %v2240_v32 = vld [vmem:[%s2416_s24 + $0x18] sm:$0xff]  }
  0x31   : > { %v1278_v11 = vor.u32 %v1277_v2, %v1273_v59  ;;  %v1282_v12 = vrot.slane %v1280_v5, 1  ;;  %v2233_v16 = vld [vmem:[%s2416_s24 + $0x2c] ss:$0 sps:$4 sm:$0x11]   ;;  %v1285_v17 = vshrl.u32 %v2232_v7, 16  ;;  %v1287_v18 = vshll.u32 %v2232_v7, 16 }
  0x32   : > { %923 = vrot.lane.b32.xlu1 %v888_v30, %s2352_s28  ;;  %v1337_v15 = vrot.slane %v1335_v10, 1  ;;  %v1342_v19 = vrot.slane %v1340_v13, 1  ;;  %v434_v20 = vshrl.u32 %v2238_v14, 16  ;;  %v1331_v21 = vsel %vm360_vm1, %v1326_v8, %v1330_v4  ;;  %v2234_v25 = vld [vmem:[%s2416_s24 + $0x48] sm:$0xfe]   ;;  %v2246_v52 = vld [vmem:[%s2416_s24 + $0x54] sm:$0xff]  }
  0x33   : > { %v1289_v23 = vrot.slane %v1287_v18, 1  ;;  %v1292_v24 = vshll.u32 %v2233_v16, 16  ;;  %v1283_v26 = vsel %vm360_vm1, %v1278_v11, %v1282_v12  ;;  %v2235_v27 = vld [vmem:[%s2416_s24 + $0x50] ss:$0 sps:$4 sm:$0x11]   ;;  %v436_v28 = vshll.u32 %v2238_v14, 16 }
  0x34   : > { %915 = vrot.lane.b32.xlu0 %v840_v37, %s2352_s28  ;;  %v1338_v22 = vor.u32 %v1337_v15, %v1333_v9  ;;  %v1501_v31 = vrot.slane %v2234_v25, 1  ;;  %v1502_v33 = vrot.slane %v2235_v27, 1  ;;  %v2236_v34 = vld [vmem:[%s2416_s24 + $0x18] sm:$0xfe]   ;;  %v386_v46 = vshrl.u32 %v2240_v32, 16  ;;  %v2248_v57 = vld [vmem:[%s2416_s24 + $0x24] sm:$0xff]  }
  0x35   : > { %v1290_v29 = vor.u32 %v1289_v23, %v1285_v17  ;;  %v1294_v30 = vrot.slane %v1292_v24, 1  ;;  %v2237_v35 = vld [vmem:[%s2416_s24 + $0x20] ss:$0 sps:$4 sm:$0x11]   ;;  %v1489_v38 = vrot.slane %v2236_v34, 1  ;;  %v438_v41 = vrot.slane %v436_v28, 1 }
  0x36   : > { %1066 = vrot.lane.b32.xlu1 %v1048_v42, %s2353_s29  ;;  %v1343_v36 = vsel %vm360_vm1, %v1338_v22, %v1342_v19  ;;  %v1490_v39 = vrot.slane %v2237_v35, 1  ;;  %v2239_v40 = vld [vmem:[%s2416_s24 + $0x50] ss:$0 sps:$4 sm:$0x11]   ;;  %v1503_v44 = vsel %vm578_vm0, %v1501_v31, %v1502_v33  ;;  %v388_v47 = vshll.u32 %v2240_v32, 16  ;;  %v2262_v27 = vld [vmem:[%s2416_s24 + $0x54] sm:$0xff]  }
  0x37   : > { %v1295_v37 = vsel %vm360_vm1, %v1290_v29, %v1294_v30  ;;  %v441_v42 = vshll.u32 %v2239_v40, 16  ;;  %v439_v45 = vor.u32 %v438_v41, %v434_v20  ;;  %v2242_v51 = vld [vmem:[%s2416_s24 + $0x54] sm:$0xfe]   ;;  %v2244_v61 = vld [vmem:[%s2416_s24 + $0x24] sm:$0xfe]   ;;  %v446_v3 = vshrl.u32 %v2246_v52, 16 }
  0x38   : > { %1058 = vrot.lane.b32.xlu0 %v1036_v43, %s2353_s29  ;;  %v2241_v43 = vld [vmem:[%s2416_s24 + $0x20] ss:$0 sps:$4 sm:$0x11]   ;;  %v1491_v48 = vsel %vm578_vm0, %v1489_v38, %v1490_v39  ;;  %v1504_v56 = vrot.slane %v2242_v51, 1  ;;  %v1492_v0 = vrot.slane %v2244_v61, 1  ;;  %v448_v4 = vshll.u32 %v2246_v52, 16 }
  0x39   : > { %v443_v49 = vrot.slane %v441_v42, 1  ;;  %v2247_v2 = vld [vmem:[%s2416_s24 + $0x5c] ss:$0 sps:$4 sm:$0x11]   ;;  %v398_v10 = vshrl.u32 %v2248_v57, 16  ;;  %v400_v11 = vshll.u32 %v2248_v57, 16 }
  0x3a   : > { %1068 = vrot.lane.b32.xlu1 %v1051_v50, %s2353_s29  ;;  %v393_v50 = vshll.u32 %v2241_v43, 16  ;;  %v453_v6 = vshll.u32 %v2247_v2, 16  ;;  %v2249_v7 = vld [vmem:[%s2416_s24 + $0x2c] ss:$0 sps:$4 sm:$0x11]   ;;  %v450_v9 = vrot.slane %v448_v4, 1 }
  0x3b   : > { %v444_v58 = vsel %vm360_vm1, %v439_v45, %v443_v49  ;;  %v405_v13 = vshll.u32 %v2249_v7, 16  ;;  %v402_v15 = vrot.slane %v400_v11, 1  ;;  %v2250_v16 = vld [vmem:[%s2416_s24 + $0x48] sm:$0xfe]   ;;  %v2252_v23 = vld [vmem:[%s2416_s24 + $0x18] sm:$0xfe]  }
  0x3c   : > { %1060 = vrot.lane.b32.xlu0 %v1039_v54, %s2353_s29  ;;  %v2243_v54 = vld [vmem:[%s2416_s24 + $0x5c] ss:$0 sps:$4 sm:$0x11]   ;;  %v455_v12 = vrot.slane %v453_v6, 1  ;;  %v451_v14 = vor.u32 %v450_v9, %v446_v3  ;;  %v2254_v30 = vld [vmem:[%s2416_s24 + $0x54] sm:$0xfe]  }
  0x3d   : > { %v1505_v60 = vrot.slane %v2243_v54, 1  ;;  %v2251_v17 = vld [vmem:[%s2416_s24 + $0x50] ss:$0 sps:$4 sm:$0x11]   ;;  %v407_v18 = vrot.slane %v405_v13, 1  ;;  %v403_v20 = vor.u32 %v402_v15, %v398_v10  ;;  %v600_v33 = vrot.slane %v2254_v30, 1 }
  0x3e   : > { %1159 = vrot.lane.b32.xlu1 %v2222_v53, %s2354_s30  ;;  %v390_v53 = vrot.slane %v388_v47, 1  ;;  %v456_v19 = vsel %vm360_vm1, %v451_v14, %v455_v12  ;;  %v598_v22 = vrot.slane %v2251_v17, 1  ;;  %v2253_v24 = vld [vmem:[%s2416_s24 + $0x20] ss:$0 sps:$4 sm:$0x11]   ;;  %v892_v40 = vshll.u32 %v2262_v27, 16 }
  0x3f   : > { %v1506_v5 = vsel %vm578_vm0, %v1504_v56, %v1505_v60  ;;  %v408_v25 = vsel %vm360_vm1, %v403_v20, %v407_v18  ;;  %v586_v29 = vrot.slane %v2253_v24, 1  ;;  %v2255_v31 = vld [vmem:[%s2416_s24 + $0x5c] ss:$0 sps:$4 sm:$0x11]   ;;  %v2256_v35 = vld [vmem:[%s2416_s24 + $0x24] sm:$0xfe]  }
  0x40   : > { %1151 = vrot.lane.b32.xlu0 %v2223_v55, %s2354_s30  ;;  %v395_v55 = vrot.slane %v393_v50, 1  ;;  %v391_v59 = vor.u32 %v390_v53, %v386_v46  ;;  %v601_v34 = vrot.slane %v2255_v31, 1  ;;  %v588_v39 = vrot.slane %v2256_v35, 1  ;;  %v2258_v42 = vld [vmem:[%s2416_s24 + $0x54] sm:$0xff]   ;;  %v2264_v43 = vld [vmem:[%s2416_s24 + $0x24] sm:$0xff]  }
  0x41   : > { %v894_v46 = vrot.slane %v892_v40, 1  ;;  %v842_v47 = vshrl.u32 %v2264_v43, 16  ;;  %v844_v49 = vshll.u32 %v2264_v43, 16  ;;  %v2260_v50 = vld [vmem:[%s2416_s24 + $0x60] sm:$0xff]   ;;  %v2261_v51 = vld [vmem:[%s2416_s24 + $0x30] sm:$0xff]  }
  0x42   : > { %1161 = vrot.lane.b32.xlu1 %v2224_v62, %s2354_s30  ;;  %v2245_v62 = vld [vmem:[%s2416_s24 + $0x2c] ss:$0 sps:$4 sm:$0x11]   ;;  %v396_v63 = vsel %vm360_vm1, %v391_v59, %v395_v55  ;;  %v602_v38 = vsel %vm578_vm0, %v600_v33, %v601_v34  ;;  %v2266_v55 = vld [vmem:[%s2416_s24 + $0x60] sm:$0xff]   ;;  %v2270_v12 = vld [vmem:[%s2416_s24 + $0x54] sm:$0xfe]  }
  0x43   : > { %v2265_v53 = vld [vmem:[%s2416_s24 + $0x2c] ss:$0 sps:$4 sm:$0x11]   ;;  %v846_v54 = vrot.slane %v844_v49, 1  ;;  %v902_v60 = vshrl.u32 %v2266_v55, 16  ;;  %v2278_v40 = vld [vmem:[%s2416_s24 + $0x60] sm:$0xff]  }
  0x44   : > { %1153 = vrot.lane.b32.xlu0 %v2225_v1, %s2354_s30  ;;  %v1493_v1 = vrot.slane %v2245_v62, 1  ;;  %v2267_v59 = vld [vmem:[%s2416_s24 + $0x68] ss:$0 sps:$4 sm:$0x11]   ;;  %v904_v62 = vshll.u32 %v2266_v55, 16  ;;  %v2279_v43 = vld [vmem:[%s2416_s24 + $0x30] sm:$0xff]  }
  0x45   : > { %v847_v61 = vor.u32 %v846_v54, %v842_v47  ;;  %v2269_v2 = vld [vmem:[%s2416_s24 + $0x38] ss:$0 sps:$4 sm:$0x11]   ;;  %v2271_v13 = vld [vmem:[%s2416_s24 + $0x5c] ss:$0 sps:$4 sm:$0x11]  }
  0x46   : > { %1376 = vrot.lane.b32.xlu1 %v1331_v21, %s2355_s4  ;;  %v1494_v8 = vsel %vm578_vm0, %v1492_v0, %v1493_v1  ;;  %v597_v21 = vrot.slane %v2250_v16, 1  ;;  %v909_v1 = vshll.u32 %v2267_v59, 16  ;;  %v906_v3 = vrot.slane %v904_v62, 1  ;;  %v2272_v17 = vld [vmem:[%s2416_s24 + $0x24] sm:$0xfe]   ;;  %v2286_v49 = vld [vmem:[%s2416_s24 + $0x6c] sm:$0xff]  }
  0x47   : > { %v1052_v16 = vrot.slane %v2270_v12, 1  ;;  %v2273_v20 = vld [vmem:[%s2416_s24 + $0x2c] ss:$0 sps:$4 sm:$0x11]   ;;  %v2276_v30 = vld [vmem:[%s2416_s24 + $0x30] sm:$0xfe]  }
  0x48   : > { %1368 = vrot.lane.b32.xlu0 %v1283_v26, %s2355_s4  ;;  %v585_v26 = vrot.slane %v2252_v23, 1  ;;  %v599_v28 = vsel %vm578_vm0, %v597_v21, %v598_v22  ;;  %v911_v7 = vrot.slane %v909_v1, 1  ;;  %v907_v10 = vor.u32 %v906_v3, %v902_v60  ;;  %v2282_v23 = vld [vmem:[%s2416_s24 + $0x60] sm:$0xff]   ;;  %v2285_v47 = vld [vmem:[%s2416_s24 + $0x38] ss:$0 sps:$4 sm:$0x11]  }
  0x49   : > { %v1040_v22 = vrot.slane %v2272_v17, 1  ;;  %v1041_v24 = vrot.slane %v2273_v20, 1  ;;  %v1345_v33 = vshrl.u32 %v2282_v23, 16  ;;  %v1043_v34 = vrot.slane %v2276_v30, 1 }
  0x4a   : > { %1378 = vrot.lane.b32.xlu1 %v1343_v36, %s2355_s4  ;;  %v587_v32 = vsel %vm578_vm0, %v585_v26, %v586_v29  ;;  %v2257_v36 = vld [vmem:[%s2416_s24 + $0x2c] ss:$0 sps:$4 sm:$0x11]   ;;  %v912_v18 = vsel %vm360_vm1, %v907_v10, %v911_v7  ;;  %v2275_v26 = vld [vmem:[%s2416_s24 + $0x68] ss:$0 sps:$4 sm:$0x11]  }
  0x4b   : > { %v589_v41 = vrot.slane %v2257_v36, 1  ;;  %v1056_v29 = vrot.slane %v2275_v26, 1  ;;  %v1042_v31 = vsel %vm578_vm0, %v1040_v22, %v1041_v24  ;;  %v1347_v35 = vshll.u32 %v2282_v23, 16  ;;  %v2294_v24 = vld [vmem:[%s2416_s24 + $0x6c] sm:$0xfe]  }
  0x4c   : > { %1370 = vrot.lane.b32.xlu0 %v1295_v37, %s2355_s4  ;;  %v890_v37 = vshrl.u32 %v2262_v27, 16  ;;  %v1359_v55 = vshll.u32 %v2286_v49, 16  ;;  %v1357_v59 = vshrl.u32 %v2286_v49, 16  ;;  %v2297_v30 = vld [vmem:[%s2416_s24 + $0x44] ss:$0 sps:$4 sm:$0x11]  }
  0x4d   : > { %v590_v45 = vsel %vm578_vm0, %v588_v39, %v589_v41  ;;  %v1349_v41 = vrot.slane %v1347_v35, 1  ;;  %v2301_v35 = vld [vmem:[%s2416_s24 + $0x30] sm:$0xff]  }
  0x4e   : > { %1521 = vrot.lane.b32.xlu1 %v1503_v44, %s2356_s5  ;;  %v2259_v44 = vld [vmem:[%s2416_s24 + $0x24] sm:$0xff]   ;;  %v895_v56 = vor.u32 %v894_v46, %v890_v37  ;;  %v2284_v37 = vld [vmem:[%s2416_s24 + $0x30] sm:$0xff]   ;;  %268 = vst.msk [vmem:[#allocation2 + $0x20] sm:$0xff] %vm263_vm2, %v2301_v35 }
  0x4f   : > { %v1350_v54 = vor.u32 %v1349_v41, %v1345_v33 }
  0x50   : > { %1513 = vrot.lane.b32.xlu0 %v1491_v48, %s2356_s5  ;;  %v2263_v48 = vld [vmem:[%s2416_s24 + $0x5c] ss:$0 sps:$4 sm:$0x11]  }
  0x51   : > { %v897_v52 = vshll.u32 %v2263_v48, 16 }
  0x52   : > { %469 = vrot.lane.b32.xlu1 %v444_v58, %s2351_s27  ;;  %v849_v58 = vshll.u32 %v2265_v53, 16  ;;  %v2287_v53 = vld [vmem:[%s2416_s24 + $0x74] ss:$0 sps:$4 sm:$0x11]  }
  0x53   : > { %v899_v57 = vrot.slane %v897_v52, 1  ;;  %v1304_v52 = vshll.u32 %v2285_v47, 16  ;;  %v1364_v60 = vshll.u32 %v2287_v53, 16  ;;  %v2306_v47 = vld [vmem:[%s2416_s24 + $0x54] sm:$0xff]  }
  0x54   : > { %461 = vrot.lane.b32.xlu0 %v396_v63, %s2351_s27  ;;  %v2268_v63 = vld [vmem:[%s2416_s24 + $0x30] sm:$0xff]   ;;  %v851_v0 = vrot.slane %v849_v58, 1  ;;  %271 = vst.msk [vmem:[#allocation2 + $0x38] sm:$0xff] %vm263_vm2, %v2306_v47 }
  0x55   : > { %v854_v4 = vshrl.u32 %v2268_v63, 16  ;;  %v900_v6 = vsel %vm360_vm1, %v895_v56, %v899_v57  ;;  %v2288_v56 = vld [vmem:[%s2416_s24 + $0x3c] sm:$0xff]   ;;  %v1306_v62 = vrot.slane %v1304_v52, 1  ;;  %v1366_v10 = vrot.slane %v1364_v60, 1 }
  0x56   : > { %1523 = vrot.lane.b32.xlu1 %v1506_v5, %s2356_s5  ;;  %v856_v5 = vshll.u32 %v2268_v63, 16  ;;  %v852_v9 = vsel %vm360_vm1, %v847_v61, %v851_v0  ;;  %v2289_v61 = vld [vmem:[%s2416_s24 + $0x44] ss:$0 sps:$4 sm:$0x11]   ;;  %v1361_v0 = vrot.slane %v1359_v55, 1  ;;  %v1309_v1 = vshrl.u32 %v2288_v56, 16 }
  0x57   : > { %v1316_v3 = vshll.u32 %v2289_v61, 16 }
  0x58   : > { %1515 = vrot.lane.b32.xlu0 %v1494_v8, %s2356_s5  ;;  %v861_v8 = vshll.u32 %v2269_v2, 16  ;;  %v858_v11 = vrot.slane %v856_v5, 1  ;;  %v1311_v2 = vshll.u32 %v2288_v56, 16  ;;  %v2290_v5 = vld [vmem:[%s2416_s24 + $0x60] sm:$0xfe]  }
  0x5a   : > { %471 = vrot.lane.b32.xlu1 %v456_v19, %s2351_s27  ;;  %v863_v14 = vrot.slane %v861_v8, 1  ;;  %v859_v15 = vor.u32 %v858_v11, %v854_v4  ;;  %v1053_v19 = vrot.slane %v2271_v13, 1  ;;  %v1313_v4 = vrot.slane %v1311_v2, 1  ;;  %v2298_v11 = vld [vmem:[%s2416_s24 + $0xc] sm:$0xff]  }
  0x5b   : > { %265 = vst.msk [vmem:[#allocation2 + $0x8] sm:$0xff] %vm263_vm2, %v2298_v11 }
  0x5c   : > { %463 = vrot.lane.b32.xlu0 %v408_v25, %s2351_s27  ;;  %v864_v21 = vsel %vm360_vm1, %v859_v15, %v863_v14  ;;  %v2274_v25 = vld [vmem:[%s2416_s24 + $0x60] sm:$0xfe]   ;;  %v1054_v27 = vsel %vm578_vm0, %v1052_v16, %v1053_v19  ;;  %v1314_v13 = vor.u32 %v1313_v4, %v1309_v1  ;;  %v1318_v14 = vrot.slane %v1316_v3, 1  ;;  %v2292_v16 = vld [vmem:[%s2416_s24 + $0x30] sm:$0xfe]   ;;  %s2756_s27 = scalar_lea.vmem %s2792_s3, %s1825_s22 }
  0x5d   : > { %v1507_v15 = vrot.slane %v2290_v5, 1  ;;  %v1495_v20 = vrot.slane %v2292_v16, 1 }
  0x5e   : > { %615 = vrot.lane.b32.xlu1 %v599_v28, %s2350_s26  ;;  %v1055_v28 = vrot.slane %v2274_v25, 1  ;;  %v2295_v25 = vld [vmem:[%s2416_s24 + $0x74] ss:$0 sps:$4 sm:$0x11]   ;;  %v1319_v26 = vsel %vm360_vm1, %v1314_v13, %v1318_v14 }
  0x60   : > { %607 = vrot.lane.b32.xlu0 %v587_v32, %s2350_s26  ;;  %v2277_v32 = vld [vmem:[%s2416_s24 + $0x38] ss:$0 sps:$4 sm:$0x11]  }
  0x61   : > { %v1044_v36 = vrot.slane %v2277_v32, 1 }
  0x62   : > { %617 = vrot.lane.b32.xlu1 %v602_v38, %s2350_s26  ;;  %v1057_v38 = vsel %vm578_vm0, %v1055_v28, %v1056_v29  ;;  %v1510_v28 = vrot.slane %v2294_v24, 1  ;;  %v2296_v29 = vld [vmem:[%s2416_s24 + $0x3c] sm:$0xfe]  }
  0x63   : > { %v1045_v39 = vsel %vm578_vm0, %v1043_v34, %v1044_v36  ;;  %v1511_v34 = vrot.slane %v2295_v25, 1 }
  0x64   : > { %609 = vrot.lane.b32.xlu0 %v590_v45, %s2350_s26  ;;  %v1299_v45 = vshll.u32 %v2284_v37, 16 }
  0x65   : > { %v1512_v41 = vsel %vm578_vm0, %v1510_v28, %v1511_v34 }
  0x66   : > { %708 = vrot.lane.b32.xlu1 %v2258_v42, %s2349_s25  ;;  %v1297_v42 = vshrl.u32 %v2284_v37, 16  ;;  %v1301_v48 = vrot.slane %v1299_v45, 1  ;;  %v1498_v37 = vrot.slane %v2296_v29, 1  ;;  %v2305_v45 = vld [vmem:[%s2790_s1 + $0x8] sm:$0xff]  }
  0x68   : > { %700 = vrot.lane.b32.xlu0 %v2259_v44, %s2349_s25  ;;  %v2283_v44 = vld [vmem:[%s2416_s24 + $0x68] ss:$0 sps:$4 sm:$0x11]   ;;  %v1302_v58 = vor.u32 %v1301_v48, %v1297_v42 }
  0x69   : > { %v1352_v46 = vshll.u32 %v2283_v44, 16  ;;  %v2304_v44 = vld [vmem:[%s2790_s1] sm:$0xff]  }
  0x6a   : > { %710 = vrot.lane.b32.xlu1 %v2260_v50, %s2349_s25  ;;  %v2280_v50 = vld [vmem:[%s2416_s24 + $0x6c] sm:$0xff]   ;;  %v1307_v12 = vsel %vm360_vm1, %v1302_v58, %v1306_v62  ;;  %2107 = vmatprep.subr.bf16.mxu0 %v2304_v44  ;;  %v2307_v48 = vld [vmem:[%s2416_s24 + $0x24] sm:$0xff]  }
  0x6b   : > { %v1354_v57 = vrot.slane %v1352_v46, 1  ;;  %2129 = vmatprep.subr.bf16.mxu1 %v2304_v44  ;;  %2108 = vmatpush3.bf16.msra.mxu0 %v2304_v44  ;;  %267 = vst.msk [vmem:[#allocation2 + $0x18] sm:$0xff] %vm263_vm2, %v2307_v48 }
  0x6c   : > { %702 = vrot.lane.b32.xlu0 %v2261_v51, %s2349_s25  ;;  %v2281_v51 = vld [vmem:[%s2416_s24 + $0x3c] sm:$0xff]   ;;  %2132 = vmatpush3.bf16.msra.mxu1 %v2304_v44 }
  0x6d   : > { %v1355_v7 = vsel %vm360_vm1, %v1350_v54, %v1354_v57  ;;  %2109 = vmatprep.subr.bf16.mxu0 %v2305_v45  ;;  %2130 = vmatprep.subr.bf16.mxu1 %v2305_v45 }
  0x6e   : > { %925 = vrot.lane.b32.xlu1 %v900_v6, %s2352_s28  ;;  %v2291_v6 = vld [vmem:[%s2416_s24 + $0x68] ss:$0 sps:$4 sm:$0x11]  }
  0x6f   : > { %v1508_v17 = vrot.slane %v2291_v6, 1  ;;  %2110 = vmatpush3.bf16.msra.mxu0 %v2305_v45 }
  0x70   : > { %917 = vrot.lane.b32.xlu0 %v852_v9, %s2352_s28  ;;  %v1362_v9 = vor.u32 %v1361_v0, %v1357_v59  ;;  %2133 = vmatpush3.bf16.msra.mxu1 %v2305_v45 }
  0x71   : > { %v1509_v32 = vsel %vm578_vm0, %v1507_v15, %v1508_v17 }
  0x72   : > { %927 = vrot.lane.b32.xlu1 %v912_v18, %s2352_s28  ;;  %v2293_v18 = vld [vmem:[%s2416_s24 + $0x38] ss:$0 sps:$4 sm:$0x11]   ;;  %v1367_v22 = vsel %vm360_vm1, %v1362_v9, %v1366_v10 }
  0x73   : > { %v1496_v23 = vrot.slane %v2293_v18, 1 }
  0x74   : > { %919 = vrot.lane.b32.xlu0 %v864_v21, %s2352_s28  ;;  %v2299_v21 = vld [vmem:[%s2416_s24] sm:$0xff]  }
  0x75   : > { %264 = vst.msk [vmem:[#allocation2] sm:$0xff] %vm263_vm2, %v2299_v21  ;;  %v1497_v36 = vsel %vm578_vm0, %v1495_v20, %v1496_v23 }
  0x76   : > { %1070 = vrot.lane.b32.xlu1 %v1054_v27, %s2353_s29 }
  0x78   : > { %1062 = vrot.lane.b32.xlu0 %v1042_v31, %s2353_s29  ;;  %v2300_v31 = vld [vmem:[%s2416_s24 + $0x3c] sm:$0xff]  }
  0x79   : > { %269 = vst.msk [vmem:[#allocation2 + $0x28] sm:$0xff] %vm263_vm2, %v2300_v31 }
  0x7a   : > { %1072 = vrot.lane.b32.xlu1 %v1057_v38, %s2353_s29  ;;  %v1499_v38 = vrot.slane %v2297_v30, 1 }
  0x7c   : > { %1064 = vrot.lane.b32.xlu0 %v1045_v39, %s2353_s29  ;;  %v1500_v42 = vsel %vm578_vm0, %v1498_v37, %v1499_v38 }
  0x7e   : > { %1163 = vrot.lane.b32.xlu1 %v2278_v40, %s2354_s30  ;;  %v2302_v40 = vld [vmem:[%s2416_s24 + $0x48] sm:$0xff]  }
  0x7f   : > { %270 = vst.msk [vmem:[#allocation2 + $0x30] sm:$0xff] %vm263_vm2, %v2302_v40 }
  0x80   : > { %1155 = vrot.lane.b32.xlu0 %v2279_v43, %s2354_s30  ;;  %v2303_v43 = vld [vmem:[%s2416_s24 + $0x18] sm:$0xff]  }
  0x81   : > { %266 = vst.msk [vmem:[#allocation2 + $0x10] sm:$0xff] %vm263_vm2, %v2303_v43 }
  0x82   : > { %1165 = vrot.lane.b32.xlu1 %v2280_v50, %s2354_s30  ;;  %v2308_v50 = vld [vmem:[%s2790_s1 + $0x10] ss:$0 sps:$4 sm:$0x33]  }
  0x83   : > { %2135 = vmatprep.subr.msk.bf16.mxu0 %vm1606_vm6, %v2308_v50  ;;  %2136 = vmatprep.subr.msk.bf16.mxu1 %vm1606_vm6, %v2308_v50  ;;  %v1608_v53 = vsel %vm1606_vm6, %v2308_v50, 0 }
  0x84   : > { %1157 = vrot.lane.b32.xlu0 %v2281_v51, %s2354_s30  ;;  %2112 = vmatpush3.bf16.msra.mxu0 %v1608_v53 }
  0x85   : > { %2134 = vmatpush3.bf16.msra.mxu1 %v1608_v53 }
  0x86   : > { %1380 = vrot.lane.b32.xlu1 %v1355_v7, %s2355_s4 }
  0x88   : > { %v2616_v63 = vpop.permute.xlu1 %704  ;;  %v2623_v8 = vpop.permute.xlu0 %696  ;;  %1372 = vrot.lane.b32.xlu0 %v1307_v12, %s2355_s4 }
  0x8a   : > { %1382 = vrot.lane.b32.xlu1 %v1367_v22, %s2355_s4 }
  0x8c   : > { %v2631_v19 = vpop.permute.xlu1 %611  ;;  %1374 = vrot.lane.b32.xlu0 %v1319_v26, %s2355_s4 }
  0x8d   : > { %v604_v27 = vpop.permute.xlu0 %603 }
  0x8e   : > { %1525 = vrot.lane.b32.xlu1 %v1509_v32, %s2356_s5 }
  0x90   : > { %v614_v33 = vpop.permute.xlu1 %613  ;;  %1517 = vrot.lane.b32.xlu0 %v1497_v36, %s2356_s5 }
  0x91   : > { %v606_v39 = vpop.permute.xlu0 %605 }
  0x92   : > { %1527 = vrot.lane.b32.xlu1 %v1512_v41, %s2356_s5 }
  0x94   : > { %v460_v46 = vpop.permute.xlu1 %459  ;;  %1519 = vrot.lane.b32.xlu0 %v1500_v42, %s2356_s5 }
  0x95   : > { %483 = vst.msk [vmem:[#allocation2 + $0x8] sm:$0xff] %vm481_vm3, %v460_v46 }
  0x96   : > { %v458_v49 = vpop.permute.xlu0 %457  ;;  %629 = vst.msk [vmem:[#allocation2 + $0x8] sm:$0xff] %vm627_vm4, %v606_v39 }
  0x97   : > { %482 = vst.msk [vmem:[#allocation2] sm:$0xff] %vm481_vm3, %v458_v49 }
  0x98   : > { %628 = vst.msk [vmem:[#allocation2] sm:$0xff] %vm627_vm4, %v604_v27  ;;  %v468_v51 = vpop.permute.xlu1 %467 }
  0x99   : > { %721 = vst.msk [vmem:[#allocation2] sm:$0xff] %vm720_vm5, %v2623_v8 }
  0x9a   : > { %487 = vst.msk [vmem:[#allocation2 + $0x28] sm:$0xff] %vm481_vm3, %v468_v51  ;;  %v466_v52 = vpop.permute.xlu0 %465 }
  0x9b   : > { %633 = vst.msk [vmem:[#allocation2 + $0x28] sm:$0xff] %vm627_vm4, %v614_v33 }
  0x9c   : > { %486 = vst.msk [vmem:[#allocation2 + $0x20] sm:$0xff] %vm481_vm3, %v466_v52  ;;  %v707_v54 = vpop.permute.xlu1 %706  ;;  %v2081_v52 = vld [vmem:[%s2791_s2] ss:$0 sm:$0xff] }
  0x9d   : > { %632 = vst.msk [vmem:[#allocation2 + $0x20] sm:$0xff] %vm627_vm4, %v2631_v19 }
  0x9e   : > { %725 = vst.msk [vmem:[#allocation2 + $0x20] sm:$0xff] %vm720_vm5, %v2616_v63  ;;  %726 = vst.msk [vmem:[#allocation2 + $0x28] sm:$0xff] %vm720_vm5, %v707_v54  ;;  %v699_v55 = vpop.permute.xlu0 %698 }
  0x9f   : > { %722 = vst.msk [vmem:[#allocation2 + $0x8] sm:$0xff] %vm720_vm5, %v699_v55 }
  0xa0   : > { %v922_v56 = vpop.permute.xlu1 %921 }
  0xa1   : > { %942 = vst.msk [vmem:[#allocation2 + $0x20] sm:$0xff] %vm937_vm7, %v922_v56 }
  0xa2   : > { %v914_v57 = vpop.permute.xlu0 %913 }
  0xa3   : > { %938 = vst.msk [vmem:[#allocation2] sm:$0xff] %vm937_vm7, %v914_v57 }
  0xa4   : > { %v924_v58 = vpop.permute.xlu1 %923 }
  0xa5   : > { %943 = vst.msk [vmem:[#allocation2 + $0x28] sm:$0xff] %vm937_vm7, %v924_v58 }
  0xa6   : > { %v916_v59 = vpop.permute.xlu0 %915 }
  0xa7   : > { %939 = vst.msk [vmem:[#allocation2 + $0x8] sm:$0xff] %vm937_vm7, %v916_v59 }
  0xa8   : > { %v1067_v60 = vpop.permute.xlu1 %1066 }
  0xa9   : > { %1087 = vst.msk [vmem:[#allocation2 + $0x20] sm:$0xff] %vm1082_vm8, %v1067_v60 }
  0xaa   : > { %v1059_v61 = vpop.permute.xlu0 %1058 }
  0xab   : > { %1083 = vst.msk [vmem:[#allocation2] sm:$0xff] %vm1082_vm8, %v1059_v61 }
  0xac   : > { %v1069_v62 = vpop.permute.xlu1 %1068 }
  0xad   : > { %1088 = vst.msk [vmem:[#allocation2 + $0x28] sm:$0xff] %vm1082_vm8, %v1069_v62 }
  0xae   : > { %v1061_v63 = vpop.permute.xlu0 %1060 }
  0xaf   : > { %1084 = vst.msk [vmem:[#allocation2 + $0x8] sm:$0xff] %vm1082_vm8, %v1061_v63 }
  0xb0   : > { %v1160_v0 = vpop.permute.xlu1 %1159 }
  0xb1   : > { %1180 = vst.msk [vmem:[#allocation2 + $0x20] sm:$0xff] %vm1175_vm9, %v1160_v0 }
  0xb2   : > { %v1152_v1 = vpop.permute.xlu0 %1151 }
  0xb3   : > { %1176 = vst.msk [vmem:[#allocation2] sm:$0xff] %vm1175_vm9, %v1152_v1 }
  0xb4   : > { %v1162_v2 = vpop.permute.xlu1 %1161 }
  0xb5   : > { %1181 = vst.msk [vmem:[#allocation2 + $0x28] sm:$0xff] %vm1175_vm9, %v1162_v2 }
  0xb6   : > { %v1154_v3 = vpop.permute.xlu0 %1153 }
  0xb7   : > { %1177 = vst.msk [vmem:[#allocation2 + $0x8] sm:$0xff] %vm1175_vm9, %v1154_v3 }
  0xb8   : > { %v1377_v4 = vpop.permute.xlu1 %1376 }
  0xb9   : > { %1397 = vst.msk [vmem:[#allocation2 + $0x20] sm:$0xff] %vm1392_vm10, %v1377_v4 }
  0xba   : > { %v1369_v5 = vpop.permute.xlu0 %1368 }
  0xbb   : > { %1393 = vst.msk [vmem:[#allocation2] sm:$0xff] %vm1392_vm10, %v1369_v5 }
  0xbc   : > { %v1379_v6 = vpop.permute.xlu1 %1378 }
  0xbd   : > { %1398 = vst.msk [vmem:[#allocation2 + $0x28] sm:$0xff] %vm1392_vm10, %v1379_v6 }
  0xbe   : > { %v1371_v7 = vpop.permute.xlu0 %1370 }
  0xbf   : > { %1394 = vst.msk [vmem:[#allocation2 + $0x8] sm:$0xff] %vm1392_vm10, %v1371_v7 }
  0xc0   : > { %v1522_v8 = vpop.permute.xlu1 %1521 }
  0xc1   : > { %1542 = vst.msk [vmem:[#allocation2 + $0x20] sm:$0xff] %vm1537_vm11, %v1522_v8 }
  0xc2   : > { %v1514_v9 = vpop.permute.xlu0 %1513 }
  0xc3   : > { %1538 = vst.msk [vmem:[#allocation2] sm:$0xff] %vm1537_vm11, %v1514_v9 }
  0xc4   : > { %v470_v10 = vpop.permute.xlu1 %469 }
  0xc5   : > { %488 = vst.msk [vmem:[#allocation2 + $0x30] sm:$0xff] %vm481_vm3, %v470_v10 }
  0xc6   : > { %v462_v11 = vpop.permute.xlu0 %461 }
  0xc7   : > { %484 = vst.msk [vmem:[#allocation2 + $0x10] sm:$0xff] %vm481_vm3, %v462_v11 }
  0xc8   : > { %v1524_v12 = vpop.permute.xlu1 %1523  ;;  %v1550_v13 = vld [vmem:[#allocation2 + $0x20] sm:$0xff] }
  0xc9   : > { %1543 = vst.msk [vmem:[#allocation2 + $0x28] sm:$0xff] %vm1537_vm11, %v1524_v12  ;;  %2121 = vmatprep.mubr.msk.bf16.mxu1 %vm1581_vm12, %v1550_v13 }
  0xca   : > { %v1516_v14 = vpop.permute.xlu0 %1515  ;;  %v1546_v15 = vld [vmem:[#allocation2] sm:$0xff] }
  0xcb   : > { %1539 = vst.msk [vmem:[#allocation2 + $0x8] sm:$0xff] %vm1537_vm11, %v1516_v14  ;;  %2113 = vmatprep.mubr.msk.bf16.mxu0 %vm1581_vm12, %v1546_v15 }
  0xcc   : > { %v472_v16 = vpop.permute.xlu1 %471 }
  0xcd   : > { %489 = vst.msk [vmem:[#allocation2 + $0x38] sm:$0xff] %vm481_vm3, %v472_v16 }
  0xce   : > { %v464_v17 = vpop.permute.xlu0 %463 }
  0xcf   : > { %485 = vst.msk [vmem:[#allocation2 + $0x18] sm:$0xff] %vm481_vm3, %v464_v17 }
  0xd0   : > { %v616_v18 = vpop.permute.xlu1 %615  ;;  %v1551_v19 = vld [vmem:[#allocation2 + $0x28] sm:$0xff] }
  0xd1   : > { %634 = vst.msk [vmem:[#allocation2 + $0x30] sm:$0xff] %vm627_vm4, %v616_v18  ;;  %2122 = vmatmul.mubr.msk.bf16.vlgmr.msra.gmra.mrb[0].mxu1 %vm1581_vm12, %v1551_v19 }
  0xd2   : > { %v608_v20 = vpop.permute.xlu0 %607  ;;  %v1547_v21 = vld [vmem:[#allocation2 + $0x8] sm:$0xff] }
  0xd3   : > { %630 = vst.msk [vmem:[#allocation2 + $0x10] sm:$0xff] %vm627_vm4, %v608_v20  ;;  %2114 = vmatmul.mubr.msk.bf16.vlgmr.msra.gmra.mrb[0].mxu0 %vm1581_vm12, %v1547_v21 }
  0xd4   : > { %v618_v22 = vpop.permute.xlu1 %617 }
  0xd5   : > { %635 = vst.msk [vmem:[#allocation2 + $0x38] sm:$0xff] %vm627_vm4, %v618_v22 }
  0xd6   : > { %v610_v23 = vpop.permute.xlu0 %609 }
  0xd7   : > { %631 = vst.msk [vmem:[#allocation2 + $0x18] sm:$0xff] %vm627_vm4, %v610_v23 }
  0xd8   : > { %v709_v24 = vpop.permute.xlu1 %708 }
  0xd9   : > { %727 = vst.msk [vmem:[#allocation2 + $0x30] sm:$0xff] %vm720_vm5, %v709_v24 }
  0xda   : > { %v701_v25 = vpop.permute.xlu0 %700 }
  0xdb   : > { %723 = vst.msk [vmem:[#allocation2 + $0x10] sm:$0xff] %vm720_vm5, %v701_v25 }
  0xdc   : > { %v711_v26 = vpop.permute.xlu1 %710 }
  0xdd   : > { %728 = vst.msk [vmem:[#allocation2 + $0x38] sm:$0xff] %vm720_vm5, %v711_v26 }
  0xde   : > { %v703_v27 = vpop.permute.xlu0 %702 }
  0xdf   : > { %724 = vst.msk [vmem:[#allocation2 + $0x18] sm:$0xff] %vm720_vm5, %v703_v27 }
  0xe0   : > { %v926_v28 = vpop.permute.xlu1 %925 }
  0xe1   : > { %944 = vst.msk [vmem:[#allocation2 + $0x30] sm:$0xff] %vm937_vm7, %v926_v28 }
  0xe2   : > { %v918_v29 = vpop.permute.xlu0 %917 }
  0xe3   : > { %940 = vst.msk [vmem:[#allocation2 + $0x10] sm:$0xff] %vm937_vm7, %v918_v29 }
  0xe4   : > { %v928_v30 = vpop.permute.xlu1 %927 }
  0xe5   : > { %945 = vst.msk [vmem:[#allocation2 + $0x38] sm:$0xff] %vm937_vm7, %v928_v30 }
  0xe6   : > { %v920_v31 = vpop.permute.xlu0 %919 }
  0xe7   : > { %941 = vst.msk [vmem:[#allocation2 + $0x18] sm:$0xff] %vm937_vm7, %v920_v31 }
  0xe8   : > { %v1071_v32 = vpop.permute.xlu1 %1070 }
  0xe9   : > { %1089 = vst.msk [vmem:[#allocation2 + $0x30] sm:$0xff] %vm1082_vm8, %v1071_v32 }
  0xea   : > { %v1063_v33 = vpop.permute.xlu0 %1062 }
  0xeb   : > { %1085 = vst.msk [vmem:[#allocation2 + $0x10] sm:$0xff] %vm1082_vm8, %v1063_v33 }
  0xec   : > { %v1073_v34 = vpop.permute.xlu1 %1072 }
  0xed   : > { %1090 = vst.msk [vmem:[#allocation2 + $0x38] sm:$0xff] %vm1082_vm8, %v1073_v34 }
  0xee   : > { %v1065_v35 = vpop.permute.xlu0 %1064 }
  0xef   : > { %1086 = vst.msk [vmem:[#allocation2 + $0x18] sm:$0xff] %vm1082_vm8, %v1065_v35 }
  0xf0   : > { %v1164_v36 = vpop.permute.xlu1 %1163 }
  0xf1   : > { %1182 = vst.msk [vmem:[#allocation2 + $0x30] sm:$0xff] %vm1175_vm9, %v1164_v36 }
  0xf2   : > { %v1156_v37 = vpop.permute.xlu0 %1155 }
  0xf3   : > { %1178 = vst.msk [vmem:[#allocation2 + $0x10] sm:$0xff] %vm1175_vm9, %v1156_v37 }
  0xf4   : > { %v1166_v38 = vpop.permute.xlu1 %1165 }
  0xf5   : > { %1183 = vst.msk [vmem:[#allocation2 + $0x38] sm:$0xff] %vm1175_vm9, %v1166_v38 }
  0xf6   : > { %v1158_v39 = vpop.permute.xlu0 %1157 }
  0xf7   : > { %1179 = vst.msk [vmem:[#allocation2 + $0x18] sm:$0xff] %vm1175_vm9, %v1158_v39 }
  0xf8   : > { %v1381_v40 = vpop.permute.xlu1 %1380 }
  0xf9   : > { %1399 = vst.msk [vmem:[#allocation2 + $0x30] sm:$0xff] %vm1392_vm10, %v1381_v40 }
  0xfa   : > { %v1373_v41 = vpop.permute.xlu0 %1372 }
  0xfb   : > { %1395 = vst.msk [vmem:[#allocation2 + $0x10] sm:$0xff] %vm1392_vm10, %v1373_v41 }
  0xfc   : > { %v1383_v42 = vpop.permute.xlu1 %1382 }
  0xfd   : > { %1400 = vst.msk [vmem:[#allocation2 + $0x38] sm:$0xff] %vm1392_vm10, %v1383_v42 }
  0xfe   : > { %v1375_v43 = vpop.permute.xlu0 %1374 }
  0xff   : > { %1396 = vst.msk [vmem:[#allocation2 + $0x18] sm:$0xff] %vm1392_vm10, %v1375_v43 }
 0x100   : > { %v1526_v44 = vpop.permute.xlu1 %1525 }
 0x101   : > { %1544 = vst.msk [vmem:[#allocation2 + $0x30] sm:$0xff] %vm1537_vm11, %v1526_v44 }
 0x102   : > { %v1518_v45 = vpop.permute.xlu0 %1517 }
 0x103   : > { %1540 = vst.msk [vmem:[#allocation2 + $0x10] sm:$0xff] %vm1537_vm11, %v1518_v45 }
 0x104   : > { %v1528_v46 = vpop.permute.xlu1 %1527 }
 0x105   : > { %1545 = vst.msk [vmem:[#allocation2 + $0x38] sm:$0xff] %vm1537_vm11, %v1528_v46 }
 0x106   : > { %v1520_v47 = vpop.permute.xlu0 %1519 }
 0x107   : > { %1541 = vst.msk [vmem:[#allocation2 + $0x18] sm:$0xff] %vm1537_vm11, %v1520_v47 }
 0x108   : > { %v1552_v48 = vld [vmem:[#allocation2 + $0x30] sm:$0xff] }
 0x109   : > { %2125 = vmatprep.mubr.msk.bf16.mxu1 %vm1581_vm12, %v1552_v48 }
 0x10a   : > { %v1548_v49 = vld [vmem:[#allocation2 + $0x10] sm:$0xff] }
 0x10b   : > { %2117 = vmatprep.mubr.msk.bf16.mxu0 %vm1581_vm12, %v1548_v49 }
 0x10c   : > { %v1553_v50 = vld [vmem:[#allocation2 + $0x38] sm:$0xff] }
 0x10d   : > { %2126 = vmatmul.mubr.msk.bf16.gmra.mrb[4].mxu1 %vm1581_vm12, %v1553_v50 }
 0x10e   : > { %v1549_v51 = vld [vmem:[#allocation2 + $0x18] sm:$0xff] }
 0x10f   : > { %2118 = vmatmul.mubr.msk.bf16.gmra.mrb[4].mxu0 %vm1581_vm12, %v1549_v51 }
 0x1a4   : > { %v2123_v53 = vpop.f32.mrb[0].mxu1 }
 0x1a5   : > { %v1685_v55 = vadd.f32 %v2123_v53, %v2081_v52  ;;  %v1676_v56 = vpop.f32.mrb[1].mxu1 }
 0x1a6   : > { %v2115_v54 = vpop.f32.mrb[0].mxu0  ;;  %v1677_v59 = vadd.f32 %v2081_v52, %v1676_v56  ;;  %v2124_v60 = vpop.f32.mrb[2].mxu1 }
 0x1a7   : > { %v1653_v57 = vadd.f32 %v2115_v54, %v2081_v52  ;;  %v1644_v58 = vpop.f32.mrb[1].mxu0  ;;  %1717 = vst [vmem:[%s2756_s27 + $0x50] sm:$0xff] %v1685_v55  ;;  %v1688_v63 = vadd.f32 %v2124_v60, %v2081_v52  ;;  %v1679_v0 = vpop.f32.mrb[3].mxu1 }
 0x1a8   : > { %v1645_v61 = vadd.f32 %v2081_v52, %v1644_v58  ;;  %v2116_v62 = vpop.f32.mrb[2].mxu0  ;;  %1715 = vst [vmem:[%s2756_s27 + $0x40] sm:$0xff] %v1677_v59  ;;  %v1680_v3 = vadd.f32 %v2081_v52, %v1679_v0 }
 0x1a9   : > { %1709 = vst [vmem:[%s2756_s27 + $0x10] sm:$0xff] %v1653_v57  ;;  %v1656_v1 = vadd.f32 %v2116_v62, %v2081_v52  ;;  %v1647_v2 = vpop.f32.mrb[3].mxu0  ;;  %1718 = vst [vmem:[%s2756_s27 + $0x58] sm:$0xff] %v1688_v63 }
 0x1aa   : > { %1707 = vst [vmem:[%s2756_s27] sm:$0xff] %v1645_v61  ;;  %v1648_v4 = vadd.f32 %v2081_v52, %v1647_v2  ;;  %1716 = vst [vmem:[%s2756_s27 + $0x48] sm:$0xff] %v1680_v3 }
 0x1ab   : > { %1710 = vst [vmem:[%s2756_s27 + $0x18] sm:$0xff] %v1656_v1 }
 0x1ac   : > { %1708 = vst [vmem:[%s2756_s27 + $0x8] sm:$0xff] %v1648_v4 }
 0x1e0   : > { %v2127_v5 = vpop.f32.mrb[4].mxu1 }
 0x1e1   : > { %v1701_v7 = vadd.f32 %v2127_v5, %v2081_v52  ;;  %v1692_v8 = vpop.f32.mrb[5].mxu1 }
 0x1e2   : > { %v2119_v6 = vpop.f32.mrb[4].mxu0  ;;  %v1693_v11 = vadd.f32 %v2081_v52, %v1692_v8  ;;  %v2128_v12 = vpop.f32.mrb[6].mxu1 }
 0x1e3   : > { %v1669_v9 = vadd.f32 %v2119_v6, %v2081_v52  ;;  %v1660_v10 = vpop.f32.mrb[5].mxu0  ;;  %1721 = vst [vmem:[%s2756_s27 + $0x70] sm:$0xff] %v1701_v7  ;;  %v1704_v15 = vadd.f32 %v2128_v12, %v2081_v52  ;;  %v1695_v16 = vpop.f32.mrb[7].mxu1 }
 0x1e4   : > { %v1661_v13 = vadd.f32 %v2081_v52, %v1660_v10  ;;  %v2120_v14 = vpop.f32.mrb[6].mxu0  ;;  %1719 = vst [vmem:[%s2756_s27 + $0x60] sm:$0xff] %v1693_v11  ;;  %v1696_v19 = vadd.f32 %v2081_v52, %v1695_v16 }
 0x1e5   : > { %1713 = vst [vmem:[%s2756_s27 + $0x30] sm:$0xff] %v1669_v9  ;;  %v1672_v17 = vadd.f32 %v2120_v14, %v2081_v52  ;;  %v1663_v18 = vpop.f32.mrb[7].mxu0  ;;  %1722 = vst [vmem:[%s2756_s27 + $0x78] sm:$0xff] %v1704_v15 }
 0x1e6   : > { %1711 = vst [vmem:[%s2756_s27 + $0x20] sm:$0xff] %v1661_v13  ;;  %v1664_v20 = vadd.f32 %v2081_v52, %v1663_v18  ;;  %1720 = vst [vmem:[%s2756_s27 + $0x68] sm:$0xff] %v1696_v19 }
 0x1e7   : > { %1714 = vst [vmem:[%s2756_s27 + $0x38] sm:$0xff] %v1672_v17 }
 0x1e8   : > { %1712 = vst [vmem:[%s2756_s27 + $0x28] sm:$0xff] %v1664_v20 }
 0x1e9 PF: > { %s13_s16 = sadd.s32 1, %s2347_s16   ;;  %s2793_s12 = smov %s2339_s14 }
 0x1ea   : > { %p10_p7 = scmp.ge.s32.totalorder %s13_s16, 6   ;;  %s2794_s13 = smov %s2343_s15 }
 0x1eb   : > { %s2795_s14 = smov %s2798_s17  ;;  %s2796_s15 = smov %s2802_s18 }
 0x1ec   :  { %12 = sbr.rel (!%p10_p7) target bundleno = 3 (0x3), region = 65 }

</bundles_post_ra>
